<compile_context>
chip_gen: v6e
topology: v6e:2x2x1
jax: 0.10.0
libtpu: 0.0.40
codegen_flags: <defaults>
</compile_context>

<pallas_src>
import functools

import jax
import jax.numpy as jnp
from jax import lax
from jax.experimental import pallas as pl
from jax.experimental.pallas import tpu as pltpu


def _triplet_kernel(a_ref, p_ref, n_ref, o_ref, *, margin, b_true, tile_b,
                    tiles_per_core):
    c = pl.program_id(0)  # core-split axis ("parallel")
    i = pl.program_id(1)  # batch-streaming axis ("arbitrary", reduction)

    # Zero this core's partial-sum accumulator at its first batch tile.
    @pl.when(i == 0)
    def _():
        o_ref[...] = jnp.zeros_like(o_ref)

    a = a_ref[...].astype(jnp.float32)
    dp = a - p_ref[...].astype(jnp.float32)
    dn = a - n_ref[...].astype(jnp.float32)

    # Fused positive/negative reduction: one lane reduce instead of two;
    # keepdims keeps the (tile_b, 1) sublane-major layout.
    d = jnp.sum(dp * dp - dn * dn, axis=1, keepdims=True)  # (tile_b, 1)
    losses = jnp.maximum(d + margin, 0.0)                  # relu

    # Mask rows past the true batch (ragged trailing block / clamped redundant
    # block).  jnp.where is a select, so NaN/inf in dead rows cannot leak.
    row = (c * tiles_per_core + i) * tile_b + lax.broadcasted_iota(
        jnp.int32, (tile_b, 1), 0)
    losses = jnp.where(row < b_true, losses, 0.0)

    o_ref[...] += jnp.sum(losses, axis=0, keepdims=True)   # (1, 1)


def _select_hw_config():
    """Generation-dispatch the VMEM tile budget, scoped limit and core split."""
    # Conservative defaults: fit v5e's 16 MiB scoped-VMEM default, 1 core.
    budget = 12 * 1024 * 1024
    vmem_limit = None
    num_cores = 1
    try:
        cap = pltpu.get_tpu_info().vmem_capacity_bytes
        if cap >= 128 * 1024 * 1024:
            # v5e / v6e: single TensorCore, 128 MiB VMEM -> big tiles, raised
            # scoped limit so large-D shapes still compile with large blocks.
            budget = 48 * 1024 * 1024
            vmem_limit = 80 * 1024 * 1024
            num_cores = 1
        else:
            # v7x-class: 64 MiB VMEM per TC, 2 TCs -> keep ~24 MiB budget
            # (32 MiB scoped default gives headroom) and shard the batch
            # across both cores via the "parallel" grid axis.
            budget = 24 * 1024 * 1024
            vmem_limit = None
            num_cores = 2
    except Exception:
        pass
    return budget, vmem_limit, num_cores


def triplet_loss(anchor, positive, negative, margin=1.0):
    assert anchor.shape == positive.shape == negative.shape
    assert anchor.ndim == 2
    B, D = anchor.shape
    itemsize = jnp.dtype(anchor.dtype).itemsize
    sublane = {4: 8, 2: 16, 1: 32}.get(itemsize, 8)

    vmem_budget, vmem_limit, num_cores = _select_hw_config()
    if B < 2 * sublane:
        num_cores = 1

    # Bytes-per-block tile sizing.  VMEM rows are lane-padded to 128; per grid
    # step we hold 3 inputs x 2 pipeline buffers plus a few f32 rows of
    # elementwise temporaries (dp/dn chain).
    d_lanes = max(128, ((D + 127) // 128) * 128)
    bytes_per_row = 3 * 2 * d_lanes * itemsize + 4 * d_lanes * 4
    max_rows = max(sublane,
                   (vmem_budget // bytes_per_row) // sublane * sublane)

    rows_per_core = pl.cdiv(B, num_cores)
    tile_b = min(max_rows, ((rows_per_core + sublane - 1) // sublane) * sublane)
    if tile_b >= B:
        tile_b = B          # single block; block dims == array dims is legal
        num_cores = 1

    num_blocks = pl.cdiv(B, tile_b)
    if num_cores > 1 and num_blocks >= num_cores:
        tiles_per_core = pl.cdiv(num_blocks, num_cores)
    else:
        num_cores = 1
        tiles_per_core = num_blocks
    last_block = num_blocks - 1

    kernel = functools.partial(
        _triplet_kernel, margin=float(margin), b_true=B,
        tile_b=tile_b, tiles_per_core=tiles_per_core)

    def in_index(c, i):
        # Clamp so the (rare) redundant block on an odd core split never reads
        # past the array; its rows are masked out in the kernel anyway.
        return (jnp.minimum(c * tiles_per_core + i, last_block), 0)

    in_spec = pl.BlockSpec((tile_b, D), in_index)

    partials = pl.pallas_call(
        kernel,
        out_shape=jax.ShapeDtypeStruct((num_cores, 1), jnp.float32),
        grid=(num_cores, tiles_per_core),
        in_specs=[in_spec, in_spec, in_spec],
        out_specs=pl.BlockSpec((1, 1), lambda c, i: (c, 0)),
        compiler_params=pltpu.CompilerParams(
            dimension_semantics=("parallel", "arbitrary"),
            vmem_limit_bytes=vmem_limit),
        cost_estimate=pl.CostEstimate(
            flops=7 * B * D,
            transcendentals=0,
            bytes_accessed=3 * B * D * itemsize + num_cores * 4),
    )(anchor, positive, negative)

    return jnp.sum(partials) / jnp.float32(B)


def triplet_loss_ref(anchor, positive, negative, margin=1.0):
    a = anchor.astype(jnp.float32)
    p = positive.astype(jnp.float32)
    n = negative.astype(jnp.float32)
    dpos = jnp.sum((a - p) ** 2, axis=1)
    dneg = jnp.sum((a - n) ** 2, axis=1)
    return jnp.mean(jnp.maximum(dpos - dneg + margin, 0.0))


if __name__ == "__main__":
    key = jax.random.PRNGKey(0)

    # Small demo shape consistent with the module: batch of embeddings (B, D).
    B, D = 8, 32
    ka, kp, kn = jax.random.split(key, 3)
    anchor = jax.random.normal(ka, (B, D), dtype=jnp.float32)
    positive = jax.random.normal(kp, (B, D), dtype=jnp.float32)
    negative = jax.random.normal(kn, (B, D), dtype=jnp.float32)

    out = triplet_loss(anchor, positive, negative, margin=1.0)
    out = jax.block_until_ready(out)
    ref = triplet_loss_ref(anchor, positive, negative, margin=1.0)
    assert jnp.allclose(out, ref, rtol=1e-5, atol=1e-5), (out, ref)

    # Second check: odd batch / narrow D exercising the ragged trailing block
    # (no host-side padding anymore) and, on v7x, the 2-way core split.
    B2, D2 = 50, 96
    kb = jax.random.split(key, 6)
    a2 = jax.random.normal(kb[3], (B2, D2), dtype=jnp.float32)
    p2 = jax.random.normal(kb[4], (B2, D2), dtype=jnp.float32)
    n2 = jax.random.normal(kb[5], (B2, D2), dtype=jnp.float32)
    out2 = jax.block_until_ready(triplet_loss(a2, p2, n2, margin=0.5))
    ref2 = triplet_loss_ref(a2, p2, n2, margin=0.5)
    assert jnp.allclose(out2, ref2, rtol=1e-5, atol=1e-5), (out2, ref2)

    print("KERNEL_OK")
</pallas_src>

<mosaic_0001>
module attributes {stable_mosaic.version = 11 : i64} {
  func.func @_triplet_kernel(%arg0: i32, %arg1: i32, %arg2: memref<8x32xf32, #tpu.memory_space<vmem>>, %arg3: memref<8x32xf32, #tpu.memory_space<vmem>>, %arg4: memref<8x32xf32, #tpu.memory_space<vmem>>, %arg5: memref<1x1xf32, #tpu.memory_space<vmem>>) attributes {dimension_semantics = [#tpu.dimension_semantics<parallel>, #tpu.dimension_semantics<arbitrary>], iteration_bounds = array<i64: 1, 1>, scalar_prefetch = 0 : i64, scratch_operands = 0 : i64, tpu.core_type = #tpu.core_type<tc>, window_params = [{transform_indices = @transform_0, window_bounds = array<i64: 8, 32>}, {transform_indices = @transform_1, window_bounds = array<i64: 8, 32>}, {transform_indices = @transform_2, window_bounds = array<i64: 8, 32>}, {transform_indices = @transform_3, window_bounds = array<i64: 1, 1>}]} {
    %c0_i32 = arith.constant 0 : i32
    %0 = arith.cmpi eq, %arg1, %c0_i32 : i32
    %1 = arith.extui %0 : i1 to i32
    %c0_i32_0 = arith.constant 0 : i32
    %2 = arith.cmpi ne, %1, %c0_i32_0 : i32
    scf.if %2 {
      %cst_15 = arith.constant 0.000000e+00 : f32
      %32 = vector.broadcast %cst_15 : f32 to vector<1x1xf32>
      %c0_16 = arith.constant 0 : index
      %c0_17 = arith.constant 0 : index
      %33 = vector.load %arg5[%c0_16, %c0_17] : memref<1x1xf32, #tpu.memory_space<vmem>>, vector<1x1xf32>
      tpu.vector_store %arg5[%c0_16, %c0_17], %32 {strides = array<i32>} : memref<1x1xf32, #tpu.memory_space<vmem>>, vector<1x1xf32>,
    } else {
    }
    %c0 = arith.constant 0 : index
    %c0_1 = arith.constant 0 : index
    %3 = vector.load %arg2[%c0, %c0_1] : memref<8x32xf32, #tpu.memory_space<vmem>>, vector<8x32xf32>
    %c0_2 = arith.constant 0 : index
    %c0_3 = arith.constant 0 : index
    %4 = vector.load %arg3[%c0_2, %c0_3] : memref<8x32xf32, #tpu.memory_space<vmem>>, vector<8x32xf32>
    %5 = arith.subf %3, %4 : vector<8x32xf32>
    %c0_4 = arith.constant 0 : index
    %c0_5 = arith.constant 0 : index
    %6 = vector.load %arg4[%c0_4, %c0_5] : memref<8x32xf32, #tpu.memory_space<vmem>>, vector<8x32xf32>
    %7 = arith.subf %3, %6 : vector<8x32xf32>
    %8 = arith.mulf %5, %5 : vector<8x32xf32>
    %9 = arith.mulf %7, %7 : vector<8x32xf32>
    %10 = arith.subf %8, %9 : vector<8x32xf32>
    %cst = arith.constant dense<0.000000e+00> : vector<8xf32>
    %11 = vector.multi_reduction <add>, %10, %cst [1] : vector<8x32xf32> to vector<8xf32>
    %12 = vector.shape_cast %11 : vector<8xf32> to vector<8x1xf32>
    %cst_6 = arith.constant 1.000000e+00 : f32
    %13 = vector.broadcast %cst_6 : f32 to vector<8x1xf32>
    %14 = arith.addf %12, %13 : vector<8x1xf32>
    %cst_7 = arith.constant 0.000000e+00 : f32
    %15 = vector.broadcast %cst_7 : f32 to vector<8x1xf32>
    %16 = arith.maximumf %14, %15 : vector<8x1xf32>
    %c1_i32 = arith.constant 1 : i32
    %17 = arith.muli %arg0, %c1_i32 : i32
    %18 = arith.addi %17, %arg1 : i32
    %c8_i32 = arith.constant 8 : i32
    %19 = arith.muli %18, %c8_i32 : i32
    %20 = tpu.iota {dimensions = array<i32: 0>} : vector<8x1xi32>
    %21 = vector.broadcast %19 : i32 to vector<8x1xi32>
    %22 = arith.addi %21, %20 : vector<8x1xi32>
    %c8_i32_8 = arith.constant 8 : i32
    %23 = vector.broadcast %c8_i32_8 : i32 to vector<8x1xi32>
    %24 = arith.cmpi slt, %22, %23 : vector<8x1xi32>
    %cst_9 = arith.constant 0.000000e+00 : f32
    %25 = vector.broadcast %cst_9 : f32 to vector<8x1xf32>
    %26 = arith.select %24, %16, %25 : vector<8x1xi1>, vector<8x1xf32>
    %c0_10 = arith.constant 0 : index
    %c0_11 = arith.constant 0 : index
    %27 = vector.load %arg5[%c0_10, %c0_11] : memref<1x1xf32, #tpu.memory_space<vmem>>, vector<1x1xf32>
    %cst_12 = arith.constant dense<0.000000e+00> : vector<1xf32>
    %28 = vector.multi_reduction <add>, %26, %cst_12 [0] : vector<8x1xf32> to vector<1xf32>
    %29 = vector.shape_cast %28 : vector<1xf32> to vector<1x1xf32>
    %30 = arith.addf %27, %29 : vector<1x1xf32>
    %c0_13 = arith.constant 0 : index
    %c0_14 = arith.constant 0 : index
    %31 = vector.load %arg5[%c0_13, %c0_14] : memref<1x1xf32, #tpu.memory_space<vmem>>, vector<1x1xf32>
    tpu.vector_store %arg5[%c0_13, %c0_14], %30 {strides = array<i32>} : memref<1x1xf32, #tpu.memory_space<vmem>>, vector<1x1xf32>,
    return
  }
  func.func @transform_0(%arg0: i32, %arg1: i32) -> (i32, i32) {
    %c1_i32 = arith.constant 1 : i32
    %0 = arith.muli %arg0, %c1_i32 : i32
    %1 = arith.addi %0, %arg1 : i32
    %c0_i32 = arith.constant 0 : i32
    %2 = arith.minsi %1, %c0_i32 : i32
    %c0_i32_0 = arith.constant 0 : i32
    %c0_i32_1 = arith.constant 0 : i32
    return %2, %c0_i32_0 : i32, i32
  }
  func.func @transform_1(%arg0: i32, %arg1: i32) -> (i32, i32) {
    %c1_i32 = arith.constant 1 : i32
    %0 = arith.muli %arg0, %c1_i32 : i32
    %1 = arith.addi %0, %arg1 : i32
    %c0_i32 = arith.constant 0 : i32
    %2 = arith.minsi %1, %c0_i32 : i32
    %c0_i32_0 = arith.constant 0 : i32
    %c0_i32_1 = arith.constant 0 : i32
    return %2, %c0_i32_0 : i32, i32
  }
  func.func @transform_2(%arg0: i32, %arg1: i32) -> (i32, i32) {
    %c1_i32 = arith.constant 1 : i32
    %0 = arith.muli %arg0, %c1_i32 : i32
    %1 = arith.addi %0, %arg1 : i32
    %c0_i32 = arith.constant 0 : i32
    %2 = arith.minsi %1, %c0_i32 : i32
    %c0_i32_0 = arith.constant 0 : i32
    %c0_i32_1 = arith.constant 0 : i32
    return %2, %c0_i32_0 : i32, i32
  }
  func.func @transform_3(%arg0: i32, %arg1: i32) -> (i32, i32) {
    %c0_i32 = arith.constant 0 : i32
    %c0_i32_0 = arith.constant 0 : i32
    return %arg0, %c0_i32 : i32, i32
  }
}

</mosaic_0001>

<bundles_post_ra>
// kernel: tpu_custom_call.1
= control target key start
LH: loop header
LB: loop body
LE: loop exit
PB: predicated region body
PF: predicated region fallthrough
CT: control target
= control target key end

     0   :  { %8 = vsyncpa [#allocation3], 0  ;;  %s264_s0 = inlined_call_operand.hbm [shape: f32[8,32], index: 0, kind: input, shape index: {}]   ;;  %s265_s1 = inlined_call_operand.hbm [shape: f32[8,32], index: 1, kind: input, shape index: {}]   ;;  %s266_s2 = inlined_call_operand.hbm [shape: f32[8,32], index: 2, kind: input, shape index: {}]   ;;  %s267_s3 = inlined_call_operand.hbm [shape: f32[1,1], index: 3, kind: output, shape index: {}]  }
   0x1   :  { %9 = vsyncpa [#allocation6], 0 }
   0x2   :  { %10 = vsyncpa [#allocation4], 0  ;;  %s225_s12 = smov [#allocation5]   ;;  %s226_s14 = smov [#allocation2]  }
   0x3   :  { %s37_s13 = sshll.u32 %s225_s12, 4  ;;  %s22_s15 = sshll.u32 %s226_s14, 4  ;;  %s38_s13 = int_to_ptr.vmem [resolvable:$true] %s37_s13  ;;  %s23_s15 = int_to_ptr.vmem [resolvable:$true] %s22_s15 }
   0x4   :  { %s147_s16 = scalar_lea.vmem %s38_s13, 128  ;;  %p152_p1 = scmp.lt.s32.totalorder %s38_s13, %s38_s13 }
   0x5   :  { %p148_p0 = scmp.ne.s32.totalorder %s38_s13, %s147_s16  ;;  %p153_p2 = scmp.lt.s32.totalorder %s147_s16, %s147_s16 }
   0x7   :  { %p154_p3 = por %p153_p2, %p152_p1 }
   0x9   :  { %p155_p4 = pnand %p154_p3, %p148_p0 }
   0xb   :  { %158 = shalt.err (!%p155_p4)
}
   0xc   :  { %40 = dma.hbm_to_vmem [thread:$0]  %s265_s1, 128, %s38_s13, [#allocation6]  }
   0xd   :  { %s167_s19 = scalar_lea.vmem %s23_s15, 128  ;;  %p172_p6 = scmp.lt.s32.totalorder %s23_s15, %s23_s15 }
   0xe   :  { %p168_p5 = scmp.ne.s32.totalorder %s23_s15, %s167_s19  ;;  %p173_p7 = scmp.lt.s32.totalorder %s167_s19, %s167_s19 }
  0x10   :  { %p174_p8 = por %p173_p7, %p172_p6 }
  0x12   :  { %p175_p9 = pnand %p174_p8, %p168_p5 }
  0x14   :  { %178 = shalt.err (!%p175_p9)
}
  0x15   :  { %25 = dma.hbm_to_vmem [thread:$0]  %s264_s0, 128, %s23_s15, [#allocation3]  }
  0x16   :  { %s227_s22 = smov [#allocation7]  }
  0x17   :  { %s52_s23 = sshll.u32 %s227_s22, 4  ;;  %s53_s23 = int_to_ptr.vmem [resolvable:$true] %s52_s23 }
  0x18   :  { %s187_s24 = scalar_lea.vmem %s53_s23, 128  ;;  %p192_p11 = scmp.lt.s32.totalorder %s53_s23, %s53_s23 }
  0x19   :  { %p188_p10 = scmp.ne.s32.totalorder %s53_s23, %s187_s24  ;;  %p193_p12 = scmp.lt.s32.totalorder %s187_s24, %s187_s24 }
  0x1b   :  { %p194_p13 = por %p193_p12, %p192_p11 }
  0x1d   :  { %p195_p0 = pnand %p194_p13, %p188_p10 }
  0x1f   :  { %198 = shalt.err (!%p195_p0)
}
  0x20   :  { %55 = dma.hbm_to_vmem [thread:$0]  %s266_s2, 128, %s53_s23, [#allocation6]  }
  0x21   :  { %219 = dma.done.wait [#allocation3], 128  }
  0x22   :  { %220 = vsyncadd [#allocation3], 4294967168 }
  0x23   :  { %221 = dma.done.wait [#allocation6], 256  }
  0x24   :  { %222 = vsyncadd [#allocation6], 4294967040  ;;  %v80_v0 = vld [vmem:[#allocation2] sm:$0xff]  ;;  %v81_v1 = vld [vmem:[#allocation5] sm:$0xff]  ;;  %vm88_vm0 = vcmask 261120   ;;  %vm78_vm1 = vcmask 0  }
  0x25   :  { %v83_v2 = vld [vmem:[#allocation7] sm:$0xff]  ;;  %v82_v3 = vsub.f32 %v80_v0, %v81_v1  ;;  %v228_v9 = vmov 0.0   ;;  %s229_s0 = smov [#allocation8]  }
  0x26   :  { %v84_v4 = vsub.f32 %v80_v0, %v83_v2  ;;  %79 = vst.msk [vmem:[#allocation8] sm:$0x1] %vm78_vm1, %v228_v9  ;;  %s118_s2 = sshll.u32 %s229_s0, 4  ;;  %s119_s2 = int_to_ptr.vmem [resolvable:$true] %s118_s2 }
  0x27   :  { %v85_v5 = vmul.f32 %v82_v3, %v82_v3  ;;  %s199_s26 = scalar_lea.vmem %s119_s2, 16  ;;  %s203_s27 = scalar_lea.vmem %s119_s2, 32 }
  0x28   :  { %v86_v6 = vmul.f32 %v84_v4, %v84_v4  ;;  %p200_p1 = scmp.ne.s32.totalorder %s119_s2, %s199_s26  ;;  %p204_p2 = scmp.lt.s32.totalorder %s119_s2, %s119_s2 }
  0x29   :  { %p205_p3 = scmp.lt.s32.totalorder %s203_s27, %s199_s26 }
  0x2a   :  { %v87_v7 = vsub.f32 %v85_v5, %v86_v6 }
  0x2b   :  { %p206_p4 = por %p205_p3, %p204_p2 }
  0x2c   :  { %v89_v8 = vsel %vm88_vm0, %v87_v7, 0.0 }
  0x2d   :  { %90 = vadd.xlane.f32.xlu0 %v89_v8  ;;  %v102_v18 = vld [vmem:[#allocation8] sm:$0x1]  ;;  %p207_p5 = pnand %p206_p4, %p200_p1 }
  0xb6   :  { %v91_v10 = vpop.xlane.xlu0 %90 }
  0xb7   :  { %v92_v11 = vadd.f32 1.0, %v91_v10 }
  0xb9   :  { %v93_v12 = vmax.f32 %v92_v11, 0.0 }
  0xbb   :  { %v103_v13 = vrot.slane %v93_v12, 4 }
  0xbd   :  { %v104_v14 = vadd.f32 %v103_v13, %v93_v12 }
  0xbf   :  { %v105_v15 = vrot.slane %v104_v14, 2 }
  0xc1   :  { %v106_v16 = vadd.f32 %v105_v15, %v104_v14 }
  0xc3   :  { %v107_v17 = vrot.slane %v106_v16, 1 }
  0xc5   :  { %v108_v19 = vadd.f32 %v107_v17, %v106_v16 }
  0xc7   :  { %v109_v20 = vadd.f32 %v108_v19, %v102_v18 }
  0xc9   :  { %111 = vst.msk [vmem:[#allocation8] sm:$0x1] %vm78_vm1, %v109_v20 }
  0xca   :  { %210 = shalt.err (!%p207_p5)
}
  0xcb   :  { %121 = dma.vmem_to_hbm [thread:$0]  %s119_s2, 16, %s267_s3, [#allocation4]  }
  0xcc   :  { %223 = dma.done.wait [#allocation4], 16  }
  0xcd   :  { %224 = vsyncadd [#allocation4], 4294967280 }
  0xce   :  { %125 = vsyncpa [#allocation3], 1 }
  0xcf   :  { %126 = vsyncpa [#allocation6], 1 }
  0xd0   :  { %127 = vsyncpa [#allocation4], 1 }

</bundles_post_ra>
